<compile_context>
chip_gen: v6e
topology: v6e:2x2x1
jax: 0.10.0
libtpu: 0.0.40
codegen_flags: <defaults>
</compile_context>

<pallas_src>
import jax
import jax.numpy as jnp
from jax.experimental import pallas as pl
from jax.experimental.pallas import tpu as pltpu


def _copy_kernel(x_ref, o_ref):
    # x_ref and o_ref are identically shaped (row_block, lane_block) VMEM tiles at the
    # same element offsets; columns >= L_out (and rows >= N*C) in edge blocks are padded
    # on the read side and masked out of the output writeback by Pallas.
    o_ref[...] = x_ref[...]


def _round_up(x: int, m: int) -> int:
    return ((x + m - 1) // m) * m


def _cdiv(a: int, b: int) -> int:
    return (a + b - 1) // b


# ~4 MiB per tile buffer: knee of the measured tiled-copy HBM-roofline curve on v6e,
# and the biggest single lever on v7x where per-step overhead dominates sooner.
_TILE_BYTES = 4 << 20
# Below this output size a fused XLA slice beats any standalone copy kernel.
_FAST_PATH_BYTES = 1 << 20


def chomp1d(x: jnp.ndarray, chomp_size: int, *, force_pallas: bool = False) -> jnp.ndarray:
    """Equivalent of Chomp1d(chomp_size)(x) for x of shape (N, C, L)."""
    assert x.ndim == 3, "expected (batch, channels, length)"
    n, c, l = x.shape
    assert 0 <= chomp_size <= l, "chomp_size must be in [0, L]"

    if chomp_size == 0:
        # Module intent: chomp nothing (identity; .contiguous() is a no-op in JAX).
        return x

    l_out = l - chomp_size
    if l_out == 0:
        # Degenerate full chomp -> empty tensor, nothing to copy.
        return jax.lax.slice(x, (0, 0, 0), (n, c, 0))

    rows = n * c
    itemsize = jnp.dtype(x.dtype).itemsize
    out_bytes = rows * l_out * itemsize

    if not force_pallas and out_bytes < _FAST_PATH_BYTES:
        # Small input: a static slice that XLA fuses into the consumer; no standalone
        # HBM read+write round trip at all.
        return jax.lax.slice(x, (0, 0, 0), (n, c, l_out))

    # Flatten to a 2D (rows, L) view: free (row-major, last dim untouched) and it
    # decouples tiling from C and L.
    x2d = x.reshape(rows, l)

    # Sublane packing: 8 rows per vreg for 4-byte, 16 for 2-byte, 32 for 1-byte dtypes.
    sublane = max(8, 32 // max(itemsize, 1))

    # ---- Byte-budgeted, dtype-aware tile selection -------------------------------
    # Lane block is always a multiple of 128 so it satisfies the (8,128) constraint
    # for BOTH the (rows, L) input and the (rows, L_out) output, whose full extents
    # differ.  Prefer collapsing the lane grid to one block (one wide contiguous
    # output stripe per step); otherwise keep rows narrow and give lanes the budget.
    lane_full = _round_up(l_out, 128)
    if lane_full * sublane * itemsize <= _TILE_BYTES:
        lane_block = lane_full
        rows_budget = _TILE_BYTES // (lane_block * itemsize)
        row_block = min(_round_up(rows, sublane), (rows_budget // sublane) * sublane)
    else:
        # Very long sequences: tile lanes too, with a few vregs worth of rows.
        row_block = min(_round_up(rows, sublane), 8 * sublane)
        lanes_budget = _TILE_BYTES // (row_block * itemsize)
        lane_block = min(lane_full, max(128, (lanes_budget // 128) * 128))

    # v7x megacore: never leave the grid at (1, 1) if the rows can be split -- both
    # TensorCores should get a "parallel" block.  (No effect on single-TC v5e/v6e.)
    if _cdiv(rows, row_block) == 1 and _cdiv(l_out, lane_block) == 1 and rows > sublane:
        row_block = _round_up(_cdiv(rows, 2), sublane)

    grid = (_cdiv(rows, row_block), _cdiv(l_out, lane_block))

    # Double-buffered input + output tiles (4 buffers) plus slack.  At the 4 MiB tile
    # budget this tops out at ~24 MiB: above v5e's 16 MiB scoped default (hence set
    # explicitly) and comfortably under v7x's 64 MiB physical VMEM.
    tile_bytes = row_block * lane_block * itemsize
    vmem_limit_bytes = int(min(4 * tile_bytes + (8 << 20), 48 << 20))

    # Pure memory traffic: ~read + write of the kept prefix (advisory for XLA).
    moved_bytes = 2 * rows * l_out * itemsize

    out2d = pl.pallas_call(
        _copy_kernel,
        out_shape=jax.ShapeDtypeStruct((rows, l_out), x.dtype),
        grid_spec=pltpu.PrefetchScalarGridSpec(
            num_scalar_prefetch=0,
            grid=grid,
            in_specs=[pl.BlockSpec((row_block, lane_block), lambda i, j: (i, j))],
            out_specs=pl.BlockSpec((row_block, lane_block), lambda i, j: (i, j)),
        ),
        compiler_params=pltpu.CompilerParams(
            dimension_semantics=("parallel", "parallel"),
            vmem_limit_bytes=vmem_limit_bytes,
        ),
        cost_estimate=pl.CostEstimate(
            flops=0, transcendentals=0, bytes_accessed=moved_bytes
        ),
    )(x2d)

    return out2d.reshape(n, c, l_out)


if __name__ == "__main__":
    key = jax.random.PRNGKey(0)
    # Small shape consistent with a 1-D causal conv activation: (batch, channels, length)
    batch, channels, length = 2, 4, 16
    chomp_size = 3  # e.g. (kernel_size - 1) * dilation padding being chomped

    x = jax.random.normal(key, (batch, channels, length), dtype=jnp.float32)
    ref = x[:, :, :-chomp_size]

    # 1) Default path: small input takes the fused-slice fast path.
    out_fast = jax.block_until_ready(chomp1d(x, chomp_size))
    assert out_fast.shape == (batch, channels, length - chomp_size)
    assert out_fast.dtype == x.dtype
    assert jnp.array_equal(out_fast, ref)

    # 2) Force the Pallas kernel on the same small shape (exercise the TPU kernel path).
    out_pallas = jax.block_until_ready(chomp1d(x, chomp_size, force_pallas=True))
    assert out_pallas.shape == ref.shape
    assert jnp.array_equal(out_pallas, ref)

    # 3) Medium shape that naturally takes the Pallas path (>1 MiB output) and splits
    #    rows across >= 2 parallel blocks (both v7x TensorCores busy).
    xm = jax.random.normal(jax.random.PRNGKey(0), (4, 64, 1032), dtype=jnp.float32)
    outm = jax.block_until_ready(chomp1d(xm, 8))
    assert outm.shape == (4, 64, 1024)
    assert jnp.array_equal(outm, xm[:, :, :-8])

    # 4) Identity (chomp_size == 0) path.
    out0 = jax.block_until_ready(chomp1d(x, 0))
    assert jnp.array_equal(out0, x)

    print("KERNEL_OK")
</pallas_src>

<mosaic_0001>
module attributes {stable_mosaic.version = 11 : i64} {
  func.func @_copy_kernel(%arg0: i32, %arg1: i32, %arg2: memref<8x128xf32, #tpu.memory_space<vmem>>, %arg3: memref<8x128xf32, #tpu.memory_space<vmem>>) attributes {dimension_semantics = [#tpu.dimension_semantics<parallel>, #tpu.dimension_semantics<parallel>], iteration_bounds = array<i64: 1, 1>, scalar_prefetch = 0 : i64, scratch_operands = 0 : i64, tpu.core_type = #tpu.core_type<tc>, window_params = [{transform_indices = @transform_0, window_bounds = array<i64: 8, 128>}, {transform_indices = @transform_1, window_bounds = array<i64: 8, 128>}]} {
    %c0 = arith.constant 0 : index
    %c0_0 = arith.constant 0 : index
    %0 = vector.load %arg2[%c0, %c0_0] : memref<8x128xf32, #tpu.memory_space<vmem>>, vector<8x128xf32>
    %c0_1 = arith.constant 0 : index
    %c0_2 = arith.constant 0 : index
    %1 = vector.load %arg3[%c0_1, %c0_2] : memref<8x128xf32, #tpu.memory_space<vmem>>, vector<8x128xf32>
    tpu.vector_store %arg3[%c0_1, %c0_2], %0 {strides = array<i32>} : memref<8x128xf32, #tpu.memory_space<vmem>>, vector<8x128xf32>,
    return
  }
  func.func @transform_0(%arg0: i32, %arg1: i32) -> (i32, i32) {
    %c0_i32 = arith.constant 0 : i32
    return %arg0, %arg1 : i32, i32
  }
  func.func @transform_1(%arg0: i32, %arg1: i32) -> (i32, i32) {
    %c0_i32 = arith.constant 0 : i32
    return %arg0, %arg1 : i32, i32
  }
}

</mosaic_0001>

<bundles_post_ra>
// kernel: tpu_custom_call.1
= control target key start
LH: loop header
LB: loop body
LE: loop exit
PB: predicated region body
PF: predicated region fallthrough
CT: control target
= control target key end

     0   :  { %6 = vsyncpa [#allocation3], 0  ;;  %s102_s0 = inlined_call_operand.hbm [shape: f32[8,16], index: 0, kind: input, shape index: {}]   ;;  %s103_s1 = inlined_call_operand.hbm [shape: f32[8,13], index: 1, kind: output, shape index: {}]  }
   0x1   :  { %7 = vsyncpa [#allocation4], 0  ;;  %s84_s6 = smov [#allocation2]  }
   0x2   :  { %s14_s7 = sshll.u32 %s84_s6, 4  ;;  %s15_s7 = int_to_ptr.vmem [resolvable:$true] %s14_s7 }
   0x3   :  { %s48_s8 = scalar_lea.vmem %s15_s7, 128  ;;  %p53_p1 = scmp.lt.s32.totalorder %s15_s7, %s15_s7 }
   0x4   :  { %p49_p0 = scmp.ne.s32.totalorder %s15_s7, %s48_s8  ;;  %p54_p2 = scmp.lt.s32.totalorder %s48_s8, %s48_s8 }
   0x6   :  { %p55_p3 = por %p54_p2, %p53_p1 }
   0x8   :  { %p56_p4 = pnand %p55_p3, %p49_p0 }
   0xa   :  { %59 = shalt.err (!%p56_p4)
}
   0xb   :  { %17 = dma.hbm_to_vmem [thread:$0]  %s102_s0, 128, %s15_s7, [#allocation3]  }
   0xc   :  { %80 = dma.done.wait [#allocation3], 128  }
   0xd   :  { %81 = vsyncadd [#allocation3], 4294967168  ;;  %s85_s11 = smov [#allocation5]   ;;  %v21_v0 = vld [vmem:[#allocation2] sm:$0xff] }
   0xe   :  { %s29_s12 = sshll.u32 %s85_s11, 4  ;;  %22 = vst [vmem:[#allocation5] sm:$0xff] %v21_v0  ;;  %s30_s12 = int_to_ptr.vmem [resolvable:$true] %s29_s12 }
   0xf   :  { %s60_s13 = scalar_lea.vmem %s30_s12, 128  ;;  %p65_p6 = scmp.lt.s32.totalorder %s30_s12, %s30_s12 }
  0x10   :  { %p61_p5 = scmp.ne.s32.totalorder %s30_s12, %s60_s13  ;;  %p66_p7 = scmp.lt.s32.totalorder %s60_s13, %s60_s13 }
  0x12   :  { %p67_p8 = por %p66_p7, %p65_p6 }
  0x14   :  { %p68_p9 = pnand %p67_p8, %p61_p5 }
  0x16   :  { %71 = shalt.err (!%p68_p9)
}
  0x17   :  { %32 = dma.vmem_to_hbm [thread:$0]  %s30_s12, 128, %s103_s1, [#allocation4]  }
  0x18   :  { %82 = dma.done.wait [#allocation4], 128  }
  0x19   :  { %83 = vsyncadd [#allocation4], 4294967168 }
  0x1a   :  { %36 = vsyncpa [#allocation3], 1 }
  0x1b   :  { %37 = vsyncpa [#allocation4], 1 }

</bundles_post_ra>
